<compile_context>
chip_gen: v7x
topology: tpu7x:2x2x1
jax: 0.10.0
libtpu: 0.0.40
codegen_flags: <defaults>
</compile_context>

<pallas_src>
import jax
import jax.numpy as jnp
from jax.experimental import pallas as pl
from jax.experimental.pallas import tpu as pltpu


def _round_up(a: int, b: int) -> int:
    return ((a + b - 1) // b) * b


def _sublane_multiple(*dtypes) -> int:
    # Native TPU tile is (8 * (4 / itemsize), 128) along (sublane, lane).
    m = 8
    for dt in dtypes:
        m = max(m, 8 * (4 // max(1, jnp.dtype(dt).itemsize)))
    return m


def _bmm_kernel_single_k(x_ref, y_ref, o_ref):
    # Whole K fits in one tile: no accumulator needed.
    o_ref[...] = jnp.dot(
        x_ref[...], y_ref[...], preferred_element_type=jnp.float32
    ).astype(o_ref.dtype)


def _bmm_kernel_acc_in_out(x_ref, y_ref, o_ref):
    # Multi-K, f32 output: the output tile is resident across the K axis
    # (same block index for every k), so accumulate into it directly.
    @pl.when(pl.program_id(3) == 0)
    def _():
        o_ref[...] = jnp.zeros_like(o_ref)

    o_ref[...] += jnp.dot(
        x_ref[...], y_ref[...], preferred_element_type=jnp.float32
    )


def _bmm_kernel_scratch_acc(x_ref, y_ref, o_ref, acc_ref):
    # Multi-K, narrow output dtype: accumulate in f32 scratch, cast at the end.
    @pl.when(pl.program_id(3) == 0)
    def _():
        acc_ref[...] = jnp.zeros_like(acc_ref)

    acc_ref[...] += jnp.dot(
        x_ref[...], y_ref[...], preferred_element_type=jnp.float32
    )

    @pl.when(pl.program_id(3) == pl.num_programs(3) - 1)
    def _():
        o_ref[...] = acc_ref[...].astype(o_ref.dtype)


def batch_matmul(x: jax.Array, y: jax.Array, *, tm=None, tn=None, tk=None) -> jax.Array:
    """Pallas equivalent of torch.bmm(x, y)."""
    assert x.ndim == 3 and y.ndim == 3, "bmm expects rank-3 inputs"
    B, M, K = x.shape
    B2, K2, N = y.shape
    assert B == B2 and K == K2, "incompatible bmm shapes"

    out_dtype = jnp.promote_types(x.dtype, y.dtype)

    # Tile selection: MXU/layout friendly, bounded VMEM.
    sub = _sublane_multiple(x.dtype, out_dtype)
    if tm is None:
        tm = min(256, _round_up(M, sub))
    if tn is None:
        tn = min(256, _round_up(N, 128))
    if tk is None:
        tk = min(512, _round_up(K, 128))
    assert tm % sub == 0 and tn % 128 == 0 and tk % 128 == 0, "bad tile sizes"

    Mp = _round_up(M, tm)
    Np = _round_up(N, tn)
    Kp = _round_up(K, tk)

    # Zero-pad so every tile is full; K-padding contributes 0 to the dot.
    xp = x if (Mp == M and Kp == K) else jnp.pad(x, ((0, 0), (0, Mp - M), (0, Kp - K)))
    yp = y if (Kp == K and Np == N) else jnp.pad(y, ((0, 0), (0, Kp - K), (0, Np - N)))

    mt, nt, kt = Mp // tm, Np // tn, Kp // tk

    bytes_accessed = B * (
        Mp * Kp * jnp.dtype(x.dtype).itemsize * nt  # x re-read per N tile
        + Kp * Np * jnp.dtype(y.dtype).itemsize * mt  # y re-read per M tile
        + Mp * Np * jnp.dtype(out_dtype).itemsize
    )
    cost = pl.CostEstimate(
        flops=2 * B * M * N * K, transcendentals=0, bytes_accessed=bytes_accessed
    )

    if kt == 1:
        # Single K step: no reduction axis in the grid at all.
        out = pl.pallas_call(
            _bmm_kernel_single_k,
            out_shape=jax.ShapeDtypeStruct((B, Mp, Np), out_dtype),
            grid_spec=pltpu.PrefetchScalarGridSpec(
                num_scalar_prefetch=0,
                grid=(B, mt, nt),
                in_specs=[
                    pl.BlockSpec((pl.Squeezed(), tm, Kp), lambda b, i, j: (b, i, 0)),
                    pl.BlockSpec((pl.Squeezed(), Kp, tn), lambda b, i, j: (b, 0, j)),
                ],
                out_specs=pl.BlockSpec(
                    (pl.Squeezed(), tm, tn), lambda b, i, j: (b, i, j)
                ),
            ),
            compiler_params=pltpu.CompilerParams(
                dimension_semantics=("parallel", "parallel", "parallel"),
            ),
            cost_estimate=cost,
        )(xp, yp)
    else:
        acc_in_out = out_dtype == jnp.float32
        kernel = _bmm_kernel_acc_in_out if acc_in_out else _bmm_kernel_scratch_acc
        scratch = [] if acc_in_out else [pltpu.VMEM((tm, tn), jnp.float32)]
        out = pl.pallas_call(
            kernel,
            out_shape=jax.ShapeDtypeStruct((B, Mp, Np), out_dtype),
            grid_spec=pltpu.PrefetchScalarGridSpec(
                num_scalar_prefetch=0,
                grid=(B, mt, nt, kt),
                in_specs=[
                    pl.BlockSpec(
                        (pl.Squeezed(), tm, tk), lambda b, i, j, k: (b, i, k)
                    ),
                    pl.BlockSpec(
                        (pl.Squeezed(), tk, tn), lambda b, i, j, k: (b, k, j)
                    ),
                ],
                out_specs=pl.BlockSpec(
                    (pl.Squeezed(), tm, tn), lambda b, i, j, k: (b, i, j)
                ),
                scratch_shapes=scratch,
            ),
            compiler_params=pltpu.CompilerParams(
                dimension_semantics=("parallel", "parallel", "parallel", "arbitrary"),
            ),
            cost_estimate=cost,
        )(xp, yp)

    if Mp != M or Np != N:
        out = out[:, :M, :N]
    return out


if __name__ == "__main__":
    key = jax.random.PRNGKey(0)
    kx, ky, kx2, ky2, kx3, ky3 = jax.random.split(key, 6)

    # Case 1: small bmm, single-K-tile path. batch=2, M=8, K=32, N=16.
    B, M, K, N = 2, 8, 32, 16
    x = jax.random.normal(kx, (B, M, K), dtype=jnp.float32)
    y = jax.random.normal(ky, (B, K, N), dtype=jnp.float32)
    out = jax.block_until_ready(batch_matmul(x, y))
    ref = jnp.einsum("bmk,bkn->bmn", x, y)
    assert out.shape == (B, M, N)
    assert jnp.allclose(out, ref, atol=1e-5, rtol=1e-5)

    # Case 2: non-aligned M/N, multiple K tiles (tk=128 -> 3 K steps) exercising
    # the accumulate-in-output path and padding.
    B2, M2, K2, N2 = 2, 24, 384, 160
    x2 = jax.random.normal(kx2, (B2, M2, K2), dtype=jnp.float32)
    y2 = jax.random.normal(ky2, (B2, K2, N2), dtype=jnp.float32)
    out2 = jax.block_until_ready(batch_matmul(x2, y2, tk=128))
    ref2 = jnp.einsum("bmk,bkn->bmn", x2, y2)
    assert out2.shape == (B2, M2, N2)
    assert jnp.allclose(out2, ref2, atol=1e-4, rtol=1e-4)

    # Case 3: bf16 inputs with multiple K tiles -> f32 scratch accumulator path.
    B3, M3, K3, N3 = 2, 16, 256, 128
    x3 = jax.random.normal(kx3, (B3, M3, K3), dtype=jnp.bfloat16)
    y3 = jax.random.normal(ky3, (B3, K3, N3), dtype=jnp.bfloat16)
    out3 = jax.block_until_ready(batch_matmul(x3, y3, tk=128))
    ref3 = jnp.einsum(
        "bmk,bkn->bmn",
        x3.astype(jnp.float32),
        y3.astype(jnp.float32),
    ).astype(jnp.bfloat16)
    assert out3.shape == (B3, M3, N3)
    assert jnp.allclose(
        out3.astype(jnp.float32), ref3.astype(jnp.float32), atol=2e-2, rtol=2e-2
    )

    print("KERNEL_OK")
</pallas_src>

<mosaic_0001>
module attributes {stable_mosaic.version = 11 : i64} {
  func.func @_bmm_kernel_single_k(%arg0: i32, %arg1: i32, %arg2: i32, %arg3: memref<1x8x128xf32, #tpu.memory_space<vmem>>, %arg4: memref<1x128x128xf32, #tpu.memory_space<vmem>>, %arg5: memref<1x8x128xf32, #tpu.memory_space<vmem>>) attributes {dimension_semantics = [#tpu.dimension_semantics<parallel>, #tpu.dimension_semantics<parallel>, #tpu.dimension_semantics<parallel>], iteration_bounds = array<i64: 2, 1, 1>, scalar_prefetch = 0 : i64, scratch_operands = 0 : i64, tpu.core_type = #tpu.core_type<tc>, window_params = [{transform_indices = @transform_0, window_bounds = array<i64: 1, 8, 128>}, {transform_indices = @transform_1, window_bounds = array<i64: 1, 128, 128>}, {transform_indices = @transform_2, window_bounds = array<i64: 1, 8, 128>}]} {
    %c0 = arith.constant 0 : index
    %c0_0 = arith.constant 0 : index
    %c0_1 = arith.constant 0 : index
    %0 = vector.load %arg3[%c0, %c0_0, %c0_1] : memref<1x8x128xf32, #tpu.memory_space<vmem>>, vector<1x8x128xf32>
    %1 = vector.shape_cast %0 : vector<1x8x128xf32> to vector<8x128xf32>
    %c0_2 = arith.constant 0 : index
    %c0_3 = arith.constant 0 : index
    %c0_4 = arith.constant 0 : index
    %2 = vector.load %arg4[%c0_2, %c0_3, %c0_4] : memref<1x128x128xf32, #tpu.memory_space<vmem>>, vector<1x128x128xf32>
    %3 = vector.shape_cast %2 : vector<1x128x128xf32> to vector<128x128xf32>
    %cst = arith.constant dense<0.000000e+00> : vector<8x128xf32>
    %4 = tpu.matmul %1, %3, %cst {dimension_numbers = #tpu.dot_dimension_numbers<[1], [0], [0], [1], [0, 0, 1, 1], [], []>} : vector<8x128xf32>, vector<128x128xf32>, vector<8x128xf32> -> vector<8x128xf32>
    %c0_5 = arith.constant 0 : index
    %c0_6 = arith.constant 0 : index
    %c0_7 = arith.constant 0 : index
    %5 = vector.load %arg5[%c0_5, %c0_6, %c0_7] : memref<1x8x128xf32, #tpu.memory_space<vmem>>, vector<1x8x128xf32>
    %6 = vector.shape_cast %5 : vector<1x8x128xf32> to vector<8x128xf32>
    %7 = vector.shape_cast %4 : vector<8x128xf32> to vector<1x8x128xf32>
    tpu.vector_store %arg5[%c0_5, %c0_6, %c0_7], %7 {strides = array<i32>} : memref<1x8x128xf32, #tpu.memory_space<vmem>>, vector<1x8x128xf32>,
    return
  }
  func.func @transform_0(%arg0: i32, %arg1: i32, %arg2: i32) -> (i32, i32, i32) {
    %c0_i32 = arith.constant 0 : i32
    %c0_i32_0 = arith.constant 0 : i32
    return %arg0, %arg1, %c0_i32 : i32, i32, i32
  }
  func.func @transform_1(%arg0: i32, %arg1: i32, %arg2: i32) -> (i32, i32, i32) {
    %c0_i32 = arith.constant 0 : i32
    %c0_i32_0 = arith.constant 0 : i32
    return %arg0, %c0_i32, %arg2 : i32, i32, i32
  }
  func.func @transform_2(%arg0: i32, %arg1: i32, %arg2: i32) -> (i32, i32, i32) {
    %c0_i32 = arith.constant 0 : i32
    return %arg0, %arg1, %arg2 : i32, i32, i32
  }
}

</mosaic_0001>

<bundles_post_ra>
// kernel: tpu_custom_call.1
= control target key start
LH: loop header
LB: loop body
LE: loop exit
PB: predicated region body
PF: predicated region fallthrough
CT: control target
= control target key end

     0   :  { %7 = vsyncpa [#allocation3], 0  ;;  %s1026_s0 = inlined_call_operand.hbm [shape: f32[2,8,128], index: 0, kind: input, shape index: {}]   ;;  %s1027_s1 = inlined_call_operand.hbm [shape: f32[2,128,128], index: 1, kind: input, shape index: {}]   ;;  %s1028_s2 = inlined_call_operand.hbm [shape: f32[2,8,128], index: 2, kind: output, shape index: {}]  }
   0x1   :  { %9 = vsyncpa [#allocation3 + $0x1], 0 }
   0x2   :  { %10 = vsyncpa [#allocation6], 0 }
   0x3   :  { %12 = vsyncpa [#allocation6 + $0x1], 0 }
   0x4   :  { %13 = vsyncpa [#allocation4], 0 }
   0x5   :  { %15 = vsyncpa [#allocation4 + $0x1], 0  ;;  %s778_s9 = smov 0   ;;  %s780_s10 = smov 0  }
   0x6   :  { %s782_s11 = smov 0   ;;  %s784_s12 = smov 0  }
   0x7   :  { %s786_s13 = smov 0   ;;  %s788_s14 = smov 0  }
   0x8 LB: > { %s441_s15 = sadd.s32 4294967295, %s753_s14   ;;  %s442_s16 = sadd.s32 4294967294, %s753_s14   ;;  %s753_s14 = sphi %s788_s14, %s21_s14   ;;  %s749_s13 = sphi %s786_s13, %s1047_s13   ;;  %s745_s12 = sphi %s784_s12, %s1046_s12   ;;  %s741_s11 = sphi %s782_s11, %s1045_s11   ;;  %s737_s10 = sphi %s780_s10, %s1044_s10   ;;  %s733_s9 = sphi %s778_s9, %s1043_s9  }
   0x9   : > { %s40_s17 = sadd.s32 1, %s749_s13  ;;  %s49_s18 = sadd.s32 1, %s741_s11 }
   0xa   : > { %p42_p0 = scmp.ge.s32.totalorder %s40_s17, 2  ;;  %p56_p1 = scmp.ne.s32.totalorder %s741_s11, %s737_s10 }
   0xb   : > { %p57_p2 = scmp.eq.s32.totalorder %s753_s14, 0  ;;  %p62_p3 = scmp.ne.s32.totalorder %s737_s10, %s733_s9 }
   0xc   : > { %s1049_s17 = smov (%p42_p0, %s40_s17), 0  ;;  %p63_p5 = scmp.eq.s32.totalorder %s441_s15, 0 }
   0xd   : > { %p819_p4 = por %p57_p2, %p56_p1  ;;  %s44_s20 = ssub.s32 %s749_s13, %s1049_s17 }
   0xe   : > { %p118_p6 = scmp.eq.s32.totalorder %s441_s15, 1  ;;  %p47_p7 = scmp.eq.s32.totalorder %s44_s20, 0 }
   0xf   : > { %p825_p8 = por %p63_p5, %p62_p3  ;;  %p124_p10 = scmp.eq.s32.totalorder %s442_s16, 1 }
  0x10   : > { %p829_p9 = por %p118_p6, %p56_p1  ;;  %p552_p13 = scmp.lt.s32.totalorder %s753_s14, 2 }
  0x11   : > { %s1032_s21 = scalar_select %p825_p8, 1, 0 }
  0x12   : > { %s1033_s22 = scalar_select %p829_p9, 1, 0 }
  0x13   : > { %s834_s23 = scalar_select %p47_p7, %s741_s11, %s49_s18  }
  0x14   : > { %p836_p11 = por %p124_p10, %p62_p3  ;;  %s843_s25 = sand.u32 1, %s741_s11  }
  0x15   : > { %s445_s26 = sshll.u32 %s843_s25, 3  ;;  %s446_s27 = sshll.u32 %s749_s13, 7 }
  0x16   : > { %s1034_s24 = scalar_select %p836_p11, 1, 0 }
  0x17   : > { %s850_s30 = scalar_lea.hbm %s1026_s0, %s446_s27  ;;  %s148_s3 = scalar_lea.vmem [#allocation2], %s445_s26 }
  0x18   : > { %s156_s4 = sshll.u32 %s148_s3, 4  ;;  %p856_p0 = pnand %p552_p13, %p819_p4  ;;  %s852_s4 = int_to_ptr.vmem [resolvable:$true] %s156_s4 }
  0x19   : > { %s145_s6 = scalar_lea.sflag [#allocation3], %s843_s25  ;;  %s607_s7 = scalar_lea.hbm %s850_s30, 128 }
  0x1a   : > { %p608_p3 = scmp.ne.s32.totalorder %s850_s30, %s607_s7  ;;  %p609_p5 = pneg %p856_p0 }
  0x1b   : > { %s612_s16 = scalar_lea.hbm %s1026_s0, 256  ;;  %p613_p4 = scmp.lt.u32.totalorder %s850_s30, %s1026_s0 }
  0x1c   : > { %p610_p6 = pnand %p609_p5, %p608_p3  ;;  %p614_p10 = scmp.lt.u32.totalorder %s612_s16, %s607_s7 }
  0x1d   : > { %p616_p12 = scmp.lt.u32.totalorder %s607_s7, %s850_s30 }
  0x1e   : > { %p611_p7 = pneg %p610_p6  ;;  %p615_p13 = por %p614_p10, %p613_p4 }
  0x20   : > { %p617_p1 = por %p616_p12, %p615_p13 }
  0x22   : > { %p618_p2 = pnand %p617_p1, %p611_p7 }
  0x24   : > { %621 = shalt.err (!%p618_p2)
}
  0x25   : > { %s622_s20 = scalar_lea.vmem %s852_s4, 128  ;;  %s755_s26 = smov [#allocation2]  }
  0x26   : > { %p623_p3 = scmp.ne.s32.totalorder %s852_s4, %s622_s20  ;;  %s627_s27 = sshll.u32 %s755_s26, 4  ;;  %s628_s27 = int_to_ptr.vmem [resolvable:$false] %s627_s27 }
  0x27   : > { %s629_s28 = scalar_lea.vmem %s628_s27, 256  ;;  %p630_p9 = scmp.lt.s32.totalorder %s852_s4, %s628_s27 }
  0x28   : > { %p625_p6 = pnand %p623_p3, %p609_p5  ;;  %p631_p4 = scmp.lt.s32.totalorder %s629_s28, %s622_s20 }
  0x2a   : > { %p626_p11 = pneg %p625_p6  ;;  %p632_p10 = por %p631_p4, %p630_p9 }
  0x2c   : > { %p633_p12 = pnand %p632_p10, %p626_p11 }
  0x2e   : > { %636 = shalt.err (!%p633_p12)
}
  0x2f   : > { %544 = dma.hbm_to_vmem [thread:$0]  (!%p856_p0), %s850_s30, 128, %s852_s4, %s145_s6  }
  0x30   : > { %p1036_p1 = scmp.lt.s32.totalorder %s753_s14, 3  ;;  %p1037_p2 = scmp.ge.s32.totalorder %s753_s14, 1 }
  0x31   : > { %s447_s3 = sshll.u32 %s843_s25, 7  ;;  %s458_s7 = sshll.u32 %s749_s13, 11 }
  0x32   : > { %p892_p7 = pnand %p1037_p2, %p1036_p1  ;;  %s901_s16 = scalar_lea.hbm %s1027_s1, %s458_s7 }
  0x33   : > { %s167_s18 = scalar_lea.vmem [#allocation5], %s447_s3  ;;  %s164_s30 = scalar_lea.sflag [#allocation6], %s843_s25 }
  0x34   : > { %s175_s19 = sshll.u32 %s167_s18, 4  ;;  %s637_s4 = scalar_lea.hbm %s901_s16, 2048  ;;  %s903_s19 = int_to_ptr.vmem [resolvable:$true] %s175_s19 }
  0x35   : > { %p638_p9 = scmp.ne.s32.totalorder %s901_s16, %s637_s4  ;;  %s642_s26 = scalar_lea.hbm %s1027_s1, 4096 }
  0x36   : > { %p643_p3 = scmp.lt.u32.totalorder %s901_s16, %s1027_s1  ;;  %p644_p6 = scmp.lt.u32.totalorder %s642_s26, %s637_s4 }
  0x37   : > { %p640_p11 = pnand %p638_p9, %p609_p5  ;;  %p646_p10 = scmp.lt.u32.totalorder %s637_s4, %s901_s16 }
  0x38   : > { %p645_p4 = por %p644_p6, %p643_p3 }
  0x39   : > { %p641_p13 = pneg %p640_p11 }
  0x3a   : > { %p647_p12 = por %p646_p10, %p645_p4 }
  0x3c   : > { %p648_p1 = pnand %p647_p12, %p641_p13 }
  0x3e   : > { %651 = shalt.err (!%p648_p1)
}
  0x3f   : > { %s652_s3 = scalar_lea.vmem %s903_s19, 2048  ;;  %s756_s7 = smov [#allocation5]  }
  0x40   : > { %p653_p2 = scmp.ne.s32.totalorder %s903_s19, %s652_s3  ;;  %s657_s8 = sshll.u32 %s756_s7, 4  ;;  %s658_s8 = int_to_ptr.vmem [resolvable:$false] %s657_s8 }
  0x41   : > { %s659_s15 = scalar_lea.vmem %s658_s8, 4096  ;;  %p660_p8 = scmp.lt.s32.totalorder %s903_s19, %s658_s8 }
  0x42   : > { %p655_p9 = pnand %p653_p2, %p609_p5  ;;  %p661_p3 = scmp.lt.s32.totalorder %s659_s15, %s652_s3 }
  0x44   : > { %p656_p11 = pneg %p655_p9  ;;  %p662_p6 = por %p661_p3, %p660_p8 }
  0x46   : > { %p663_p4 = pnand %p662_p6, %p656_p11 }
  0x48   : > { %666 = shalt.err (!%p663_p4)
}
  0x49   : > { %s757_s18 = smov 128   ;;  %s758_s4 = smov 8  }
  0x4a   : > { %547 = dma.hbm_to_vmem [thread:$0]  (!%p856_p0), %s901_s16, 2048, %s903_s19, %s164_s30, %s757_s18, %s757_s18, %s758_s4  }
  0x4b   : > { %187 = sbr.rel (%p892_p7) target bundleno = 346 (0x15a), region = 28  ;;  %s934_s6 = sand.u32 (!%p892_p7), 1, %s737_s10  }
  0x4c   : > { %s451_s20 = sshll.u32 (!%p892_p7), %s934_s6, 3  ;;  %s190_s26 = scalar_lea.sflag (!%p892_p7), [#allocation3], %s934_s6 }
  0x4d   : > { %s940_s27 = scalar_lea.vmem (!%p892_p7), [#allocation2], %s451_s20  ;;  %p1039_p8 = scmp.ne.s32.totalorder (!%p892_p7), %s1032_s21, 0 }
  0x52   : > { %720 = dma.done.wait (%p1039_p8), %s190_s26, 128  }
  0x53   : > { %722 = vsyncadd (%p1039_p8), %s190_s26, 4294967168  ;;  %s452_s25 = sshll.u32 %s934_s6, 7  ;;  %s199_s5 = scalar_lea.sflag [#allocation6], %s934_s6 }
  0x54   : > { %s948_s29 = scalar_lea.vmem [#allocation5], %s452_s25 }
  0x55   : > { %724 = dma.done.wait (%p1039_p8), %s199_s5, 2048  }
  0x56   : > { %726 = vsyncadd (%p1039_p8), %s199_s5, 4294965248  ;;  %v759_v0 = vmov 0.0|0.0   ;;  %vm760_vm0 = vmmov 0   ;;  %v761_v1 = vmov 0.0   ;;  %v229_v2 = vld [vmem:[%s948_s29] sm:$0xff]  ;;  %v230_v3 = vld [vmem:[%s948_s29 + $0x8] sm:$0xff] }
  0x57   : > { %511 = vmatprep.subr.bf16.mxu0 %v759_v0  ;;  %508 = vmatprep.mubr.msk.f32.mxu0 %vm760_vm0, %v761_v1  ;;  %v231_v4 = vld [vmem:[%s948_s29 + $0x10] sm:$0xff]  ;;  %v512_v5 = vpack.c.bf16 %v230_v3, %v229_v2  ;;  %v232_v6 = vld [vmem:[%s948_s29 + $0x18] sm:$0xff]  ;;  %v233_v8 = vld [vmem:[%s948_s29 + $0x20] sm:$0xff]  ;;  %s227_s21 = scalar_lea.vmem [#allocation7], %s451_s20  ;;  %s455_s19 = sshll.u32 %s745_s12, 7 }
  0x58   : > { %v515_v7 = vpack.c.bf16 %v232_v6, %v231_v4  ;;  %v234_v9 = vld [vmem:[%s948_s29 + $0x28] sm:$0xff]  ;;  %v235_v11 = vld [vmem:[%s948_s29 + $0x30] sm:$0xff]  ;;  %v236_v12 = vld [vmem:[%s948_s29 + $0x38] sm:$0xff]  ;;  %s332_s16 = sshll.u32 %s227_s21, 4  ;;  %s979_s3 = scalar_lea.hbm %s1028_s2, %s455_s19  ;;  %s974_s16 = int_to_ptr.vmem [resolvable:$true] %s332_s16 }
  0x59   : > { %513 = vmatpush3.bf16.msra.mxu0 %v512_v5  ;;  %v518_v10 = vpack.c.bf16 %v234_v9, %v233_v8  ;;  %v521_v13 = vpack.c.bf16 %v236_v12, %v235_v11  ;;  %v237_v14 = vld [vmem:[%s948_s29 + $0x40] sm:$0xff]  ;;  %v238_v15 = vld [vmem:[%s948_s29 + $0x48] sm:$0xff]  ;;  %v239_v17 = vld [vmem:[%s948_s29 + $0x50] sm:$0xff]  ;;  %s317_s7 = scalar_lea.sflag [#allocation4], %s934_s6  ;;  %s667_s8 = scalar_lea.vmem %s974_s16, 128 }
  0x5a   : > { %514 = vmatprep.subr.bf16.mxu0 %v759_v0  ;;  %v524_v16 = vpack.c.bf16 %v238_v15, %v237_v14  ;;  %v240_v18 = vld [vmem:[%s948_s29 + $0x58] sm:$0xff]  ;;  %v241_v20 = vld [vmem:[%s948_s29 + $0x60] sm:$0xff]  ;;  %v242_v21 = vld [vmem:[%s948_s29 + $0x68] sm:$0xff]  ;;  %p668_p0 = scmp.ne.s32.totalorder %s974_s16, %s667_s8  ;;  %p1040_p5 = scmp.ne.s32.totalorder %s1033_s22, 0 }
  0x5b   : > { %v527_v19 = vpack.c.bf16 %v240_v18, %v239_v17  ;;  %v530_v22 = vpack.c.bf16 %v242_v21, %v241_v20  ;;  %v243_v23 = vld [vmem:[%s948_s29 + $0x70] sm:$0xff]  ;;  %v244_v24 = vld [vmem:[%s948_s29 + $0x78] sm:$0xff]  ;;  %s762_s12 = smov [#allocation7]  }
  0x5c   : > { %v533_v25 = vpack.c.bf16 %v244_v24, %v243_v23  ;;  %v228_v26 = vld [vmem:[%s940_s27] sm:$0xff]  ;;  %p669_p7 = pnand %p668_p0, %p1040_p5  ;;  %s671_s15 = sshll.u32 %s762_s12, 4  ;;  %s672_s15 = int_to_ptr.vmem [resolvable:$false] %s671_s15 }
  0x5d   : > { %516 = vmatpush3.bf16.msra.mxu0 %v515_v7  ;;  %s673_s18 = scalar_lea.vmem %s672_s15, 256  ;;  %p674_p10 = scmp.lt.s32.totalorder %s974_s16, %s672_s15 }
  0x5e   : > { %517 = vmatprep.subr.bf16.mxu0 %v759_v0  ;;  %p670_p13 = pneg %p669_p7  ;;  %p675_p12 = scmp.lt.s32.totalorder %s673_s18, %s667_s8 }
  0x60   : > { %p676_p1 = por %p675_p12, %p674_p10 }
  0x61   : > { %519 = vmatpush3.bf16.msra.mxu0 %v518_v10 }
  0x62   : > { %520 = vmatprep.subr.bf16.mxu0 %v759_v0  ;;  %p677_p2 = pnand %p676_p1, %p670_p13 }
  0x65   : > { %522 = vmatpush3.bf16.msra.mxu0 %v521_v13 }
  0x66   : > { %523 = vmatprep.subr.bf16.mxu0 %v759_v0 }
  0x69   : > { %525 = vmatpush3.bf16.msra.mxu0 %v524_v16 }
  0x6a   : > { %526 = vmatprep.subr.bf16.mxu0 %v759_v0 }
  0x6d   : > { %528 = vmatpush3.bf16.msra.mxu0 %v527_v19 }
  0x6e   : > { %529 = vmatprep.subr.bf16.mxu0 %v759_v0 }
  0x71   : > { %531 = vmatpush3.bf16.msra.mxu0 %v530_v22 }
  0x72   : > { %532 = vmatprep.subr.bf16.mxu0 %v759_v0 }
  0x75   : > { %534 = vmatpush3.bf16.msra.mxu0 %v533_v25 }
  0x78   : > { %509 = vmatmul.mubr.f32.vlgmr.msra.gmra.mrb[0].mxu0 %v228_v26 }
 0x14b   : > { %v311_v27 = vpop.f32.mrb[0].mxu0 }
 0x14c   : > { %315 = vst [vmem:[%s227_s21] sm:$0xff] %v311_v27  ;;  %v510_v28 = vpop.f32.mrb[1].mxu0 }
 0x14d   : > { %680 = shalt.err (!%p677_p2)
}
 0x14e   : > { %s681_s4 = scalar_lea.hbm %s979_s3, 128  ;;  %s685_s26 = scalar_lea.hbm %s1028_s2, 256 }
 0x14f   : > { %p682_p9 = scmp.ne.s32.totalorder %s979_s3, %s681_s4  ;;  %p686_p6 = scmp.lt.u32.totalorder %s979_s3, %s1028_s2 }
 0x150   : > { %p687_p4 = scmp.lt.u32.totalorder %s685_s26, %s681_s4  ;;  %p689_p0 = scmp.lt.u32.totalorder %s681_s4, %s979_s3 }
 0x151   : > { %p683_p11 = pnand %p682_p9, %p1040_p5 }
 0x152   : > { %p688_p8 = por %p687_p4, %p686_p6 }
 0x153   : > { %p684_p3 = pneg %p683_p11 }
 0x154   : > { %p690_p7 = por %p689_p0, %p688_p8 }
 0x156   : > { %p691_p13 = pnand %p690_p7, %p684_p3 }
 0x158   : > { %694 = shalt.err (!%p691_p13)
}
 0x159   : > { %539 = dma.vmem_to_hbm [thread:$0]  (%p1040_p5), %s974_s16, 128, %s979_s3, %s317_s7  }
 0x15a PF: > { %s344_s5 = sand.u32 1, %s733_s9   ;;  %p1041_p10 = scmp.ne.s32.totalorder %s1034_s24, 0 }
 0x15b   : > { %p1042_p12 = scmp.ge.s32.totalorder %s753_s14, 2  ;;  %s345_s29 = scalar_lea.sflag [#allocation4], %s344_s5 }
 0x15d   : > { %p549_p1 = pnand %p1042_p12, %p1041_p10 }
 0x15f   : > { %728 = dma.done.wait (!%p549_p1), %s345_s29, 128  }
 0x160   : > { %730 = vsyncadd (!%p549_p1), %s345_s29, 4294967168  ;;  %s21_s14 = sadd.s32 1, %s753_s14   ;;  %s1043_s9 = smov %s737_s10 }
 0x161   : > { %p18_p2 = scmp.ge.s32.totalorder %s21_s14, 4   ;;  %s1044_s10 = smov %s741_s11 }
 0x162   : > { %s1045_s11 = smov %s834_s23  ;;  %s1046_s12 = smov %s749_s13 }
 0x163   : > { %s1047_s13 = smov %s1049_s17  ;;  %20 = sbr.rel (!%p18_p2) target bundleno = 8 (0x8), region = 86 }
 0x16a   :  { %350 = vsyncpa [#allocation3], 1 }
 0x16b   :  { %352 = vsyncpa [#allocation3 + $0x1], 1 }
 0x16c   :  { %353 = vsyncpa [#allocation6], 1 }
 0x16d   :  { %355 = vsyncpa [#allocation6 + $0x1], 1 }
 0x16e   :  { %356 = vsyncpa [#allocation4], 1 }
 0x16f   :  { %358 = vsyncpa [#allocation4 + $0x1], 1 }

</bundles_post_ra>
